<compile_context>
chip_gen: v5e
topology: v5e:2x2
jax: 0.10.0
libtpu: 0.0.40
codegen_flags: <defaults>
</compile_context>

<pallas_src>
import jax
import jax.numpy as jnp
from jax.experimental import pallas as pl
from jax.experimental.pallas import tpu as pltpu


# ---------------------------------------------------------------------------
# Kernel 1: the two nn.Linear projections (tiny; D=32 -> negligible MXU work).
# Weights arrive pre-transposed, so y = x @ W_T + b with no in-kernel transpose.
# ---------------------------------------------------------------------------
def _proj_kernel(v_ref, t_ref, wvT_ref, bv_ref, wtT_ref, bt_ref, vp_ref, tp_ref):
    vp = jnp.dot(v_ref[...], wvT_ref[...], preferred_element_type=jnp.float32)
    tp = jnp.dot(t_ref[...], wtT_ref[...], preferred_element_type=jnp.float32)
    vp_ref[...] = (vp + bv_ref[...]).astype(vp_ref.dtype)
    tp_ref[...] = (tp + bt_ref[...]).astype(tp_ref.dtype)


# ---------------------------------------------------------------------------
# Kernel 2: broadcast / sigmoid-gate hot path, gridded over Bv tiles.
#   vp_ref    : (tBv, D)     tile of the projected visual features
#   tflat_ref : (1, Bt*D)    projected text, flattened lane-dense (grid invariant)
#   o_ref     : (tBv, Bt*D)  lane-dense output tile (last dim multiple of 128)
# ---------------------------------------------------------------------------
def _gate_kernel(vp_ref, tflat_ref, o_ref):
    tBv, D = vp_ref.shape
    BtD = tflat_ref.shape[-1]
    reps = BtD // D

    vp = vp_ref[...].astype(jnp.float32)                  # (tBv, D)
    # Lane-dense tiling of vproj: vtile[i, j*D + d] = vp[i, d]
    # (concat along the lane axis, stays in vregs/VMEM, no extra HBM traffic).
    vtile = jnp.concatenate([vp] * reps, axis=-1)         # (tBv, Bt*D)
    # Hoisted broadcast of tproj, reused by both multiplies (no duplicate broadcast).
    tb = jnp.broadcast_to(tflat_ref[...].astype(jnp.float32), (tBv, BtD))

    sims = vtile * tb                                     # VPU
    o_ref[...] = (jax.nn.sigmoid(sims) * tb).astype(o_ref.dtype)   # EUP + VPU + dense vst


def _pick_tile_bv(bv, bt, d, out_bytes=4, vmem_budget_bytes=8 << 20):
    """Largest multiple-of-8 divisor of Bv whose double-buffered output tile fits budget."""
    best = None
    for t in range(8, bv + 1, 8):
        if bv % t == 0 and 2 * t * bt * d * out_bytes <= vmem_budget_bytes:
            best = t
    return best if best is not None else bv   # tiny Bv: fall back to full-array block


def cross_attention_similarity_att(visual, text, w_visual, b_visual, w_text, b_text):
    Bv, D = visual.shape
    Bt, Dt = text.shape
    assert D == Dt

    # Trace-time prep (tiny XLA ops, done once): transpose weights so the kernel never
    # emits an in-kernel .T; reshape biases to 2D rows.
    wvT = w_visual.T
    wtT = w_text.T
    bv2 = b_visual.reshape(1, D)
    bt2 = b_text.reshape(1, D)

    # --- projections (computed once; never recomputed per Bv tile) ----------
    vproj, tproj = pl.pallas_call(
        _proj_kernel,
        out_shape=(
            jax.ShapeDtypeStruct((Bv, D), jnp.float32),
            jax.ShapeDtypeStruct((Bt, D), jnp.float32),
        ),
        grid=(1,),
        in_specs=[
            pl.BlockSpec((Bv, D), lambda i: (0, 0)),
            pl.BlockSpec((Bt, D), lambda i: (0, 0)),
            pl.BlockSpec((D, D), lambda i: (0, 0)),
            pl.BlockSpec((1, D), lambda i: (0, 0)),
            pl.BlockSpec((D, D), lambda i: (0, 0)),
            pl.BlockSpec((1, D), lambda i: (0, 0)),
        ],
        out_specs=(
            pl.BlockSpec((Bv, D), lambda i: (0, 0)),
            pl.BlockSpec((Bt, D), lambda i: (0, 0)),
        ),
        compiler_params=pltpu.CompilerParams(dimension_semantics=("arbitrary",)),
    )(visual, text, wvT, bv2, wtT, bt2)

    # Flatten tproj lane-dense in HBM (contiguous reshape, trivial).
    tproj_flat = tproj.reshape(1, Bt * D)

    # --- broadcast / sigmoid-gate hot path (pipelined over Bv tiles) --------
    tBv = _pick_tile_bv(Bv, Bt, D)
    out_flat = pl.pallas_call(
        _gate_kernel,
        out_shape=jax.ShapeDtypeStruct((Bv, Bt * D), visual.dtype),
        grid=(Bv // tBv,),
        in_specs=[
            pl.BlockSpec((tBv, D), lambda i: (i, 0)),
            pl.BlockSpec((1, Bt * D), lambda i: (0, 0)),
        ],
        out_specs=pl.BlockSpec((tBv, Bt * D), lambda i: (i, 0)),
        compiler_params=pltpu.CompilerParams(
            # parallel -> v7x megacore shards Bv tiles across both TensorCores
            dimension_semantics=("parallel",)),
    )(vproj, tproj_flat)

    # Recover the 3D (Bv, Bt, D) view; contiguous row-major reshape in HBM.
    return out_flat.reshape(Bv, Bt, D)


def _reference(visual, text, w_visual, b_visual, w_text, b_text):
    vproj = visual @ w_visual.T + b_visual
    tproj = text @ w_text.T + b_text
    sims = vproj[:, None, :] * tproj[None, :, :]
    return jax.nn.sigmoid(sims) * tproj[None, :, :]


if __name__ == "__main__":
    key = jax.random.PRNGKey(0)
    # small shapes consistent with the module; Bv=16 with tBv=8 gives a real 2-step
    # pipelined grid so the output writeback overlaps compute.
    Bv, Bt, D = 16, 8, 32

    kv, kt, kwv, kbv, kwt, kbt = jax.random.split(key, 6)
    visual = jax.random.normal(kv, (Bv, D), dtype=jnp.float32)
    text = jax.random.normal(kt, (Bt, D), dtype=jnp.float32)
    # deterministic parameter init (synthetic weights, not a checkpoint load)
    w_visual = jax.random.normal(kwv, (D, D), dtype=jnp.float32) * 0.1
    b_visual = jax.random.normal(kbv, (D,), dtype=jnp.float32) * 0.1
    w_text = jax.random.normal(kwt, (D, D), dtype=jnp.float32) * 0.1
    b_text = jax.random.normal(kbt, (D,), dtype=jnp.float32) * 0.1

    out = cross_attention_similarity_att(visual, text, w_visual, b_visual, w_text, b_text)
    out = jax.block_until_ready(out)

    ref = _reference(visual, text, w_visual, b_visual, w_text, b_text)
    assert out.shape == (Bv, Bt, D)
    assert jnp.allclose(out, ref, atol=1e-5, rtol=1e-5), "mismatch vs pure-JAX reference"

    print("KERNEL_OK")
</pallas_src>

<mosaic_0001>
module attributes {stable_mosaic.version = 11 : i64} {
  func.func @_proj_kernel(%arg0: i32, %arg1: memref<16x32xf32, #tpu.memory_space<vmem>>, %arg2: memref<8x32xf32, #tpu.memory_space<vmem>>, %arg3: memref<32x32xf32, #tpu.memory_space<vmem>>, %arg4: memref<1x32xf32, #tpu.memory_space<vmem>>, %arg5: memref<32x32xf32, #tpu.memory_space<vmem>>, %arg6: memref<1x32xf32, #tpu.memory_space<vmem>>, %arg7: memref<16x32xf32, #tpu.memory_space<vmem>>, %arg8: memref<8x32xf32, #tpu.memory_space<vmem>>) attributes {dimension_semantics = [#tpu.dimension_semantics<arbitrary>], iteration_bounds = array<i64: 1>, scalar_prefetch = 0 : i64, scratch_operands = 0 : i64, tpu.core_type = #tpu.core_type<tc>, window_params = [{pipeline_mode = #tpu.pipeline_mode<synchronous>, transform_indices = @transform_0, window_bounds = array<i64: 16, 32>}, {pipeline_mode = #tpu.pipeline_mode<synchronous>, transform_indices = @transform_1, window_bounds = array<i64: 8, 32>}, {pipeline_mode = #tpu.pipeline_mode<synchronous>, transform_indices = @transform_2, window_bounds = array<i64: 32, 32>}, {pipeline_mode = #tpu.pipeline_mode<synchronous>, transform_indices = @transform_3, window_bounds = array<i64: 1, 32>}, {pipeline_mode = #tpu.pipeline_mode<synchronous>, transform_indices = @transform_4, window_bounds = array<i64: 32, 32>}, {pipeline_mode = #tpu.pipeline_mode<synchronous>, transform_indices = @transform_5, window_bounds = array<i64: 1, 32>}, {pipeline_mode = #tpu.pipeline_mode<synchronous>, transform_indices = @transform_6, window_bounds = array<i64: 16, 32>}, {pipeline_mode = #tpu.pipeline_mode<synchronous>, transform_indices = @transform_7, window_bounds = array<i64: 8, 32>}]} {
    %c0 = arith.constant 0 : index
    %c0_0 = arith.constant 0 : index
    %0 = vector.load %arg1[%c0, %c0_0] : memref<16x32xf32, #tpu.memory_space<vmem>>, vector<16x32xf32>
    %c0_1 = arith.constant 0 : index
    %c0_2 = arith.constant 0 : index
    %1 = vector.load %arg3[%c0_1, %c0_2] : memref<32x32xf32, #tpu.memory_space<vmem>>, vector<32x32xf32>
    %cst = arith.constant dense<0.000000e+00> : vector<16x32xf32>
    %2 = tpu.matmul %0, %1, %cst {dimension_numbers = #tpu.dot_dimension_numbers<[1], [0], [0], [1], [0, 0, 1, 1], [], []>} : vector<16x32xf32>, vector<32x32xf32>, vector<16x32xf32> -> vector<16x32xf32>
    %c0_3 = arith.constant 0 : index
    %c0_4 = arith.constant 0 : index
    %3 = vector.load %arg2[%c0_3, %c0_4] : memref<8x32xf32, #tpu.memory_space<vmem>>, vector<8x32xf32>
    %c0_5 = arith.constant 0 : index
    %c0_6 = arith.constant 0 : index
    %4 = vector.load %arg5[%c0_5, %c0_6] : memref<32x32xf32, #tpu.memory_space<vmem>>, vector<32x32xf32>
    %cst_7 = arith.constant dense<0.000000e+00> : vector<8x32xf32>
    %5 = tpu.matmul %3, %4, %cst_7 {dimension_numbers = #tpu.dot_dimension_numbers<[1], [0], [0], [1], [0, 0, 1, 1], [], []>} : vector<8x32xf32>, vector<32x32xf32>, vector<8x32xf32> -> vector<8x32xf32>
    %c0_8 = arith.constant 0 : index
    %c0_9 = arith.constant 0 : index
    %6 = vector.load %arg4[%c0_8, %c0_9] : memref<1x32xf32, #tpu.memory_space<vmem>>, vector<1x32xf32>
    %7 = vector.broadcast %6 : vector<1x32xf32> to vector<16x32xf32>
    %8 = arith.addf %2, %7 : vector<16x32xf32>
    %c0_10 = arith.constant 0 : index
    %c0_11 = arith.constant 0 : index
    %9 = vector.load %arg7[%c0_10, %c0_11] : memref<16x32xf32, #tpu.memory_space<vmem>>, vector<16x32xf32>
    tpu.vector_store %arg7[%c0_10, %c0_11], %8 {strides = array<i32>} : memref<16x32xf32, #tpu.memory_space<vmem>>, vector<16x32xf32>,
    %c0_12 = arith.constant 0 : index
    %c0_13 = arith.constant 0 : index
    %10 = vector.load %arg6[%c0_12, %c0_13] : memref<1x32xf32, #tpu.memory_space<vmem>>, vector<1x32xf32>
    %11 = vector.broadcast %10 : vector<1x32xf32> to vector<8x32xf32>
    %12 = arith.addf %5, %11 : vector<8x32xf32>
    %c0_14 = arith.constant 0 : index
    %c0_15 = arith.constant 0 : index
    %13 = vector.load %arg8[%c0_14, %c0_15] : memref<8x32xf32, #tpu.memory_space<vmem>>, vector<8x32xf32>
    tpu.vector_store %arg8[%c0_14, %c0_15], %12 {strides = array<i32>} : memref<8x32xf32, #tpu.memory_space<vmem>>, vector<8x32xf32>,
    return
  }
  func.func @transform_0(%arg0: i32) -> (i32, i32) {
    %c0_i32 = arith.constant 0 : i32
    %c0_i32_0 = arith.constant 0 : i32
    %c0_i32_1 = arith.constant 0 : i32
    return %c0_i32, %c0_i32_0 : i32, i32
  }
  func.func @transform_1(%arg0: i32) -> (i32, i32) {
    %c0_i32 = arith.constant 0 : i32
    %c0_i32_0 = arith.constant 0 : i32
    %c0_i32_1 = arith.constant 0 : i32
    return %c0_i32, %c0_i32_0 : i32, i32
  }
  func.func @transform_2(%arg0: i32) -> (i32, i32) {
    %c0_i32 = arith.constant 0 : i32
    %c0_i32_0 = arith.constant 0 : i32
    %c0_i32_1 = arith.constant 0 : i32
    return %c0_i32, %c0_i32_0 : i32, i32
  }
  func.func @transform_3(%arg0: i32) -> (i32, i32) {
    %c0_i32 = arith.constant 0 : i32
    %c0_i32_0 = arith.constant 0 : i32
    %c0_i32_1 = arith.constant 0 : i32
    return %c0_i32, %c0_i32_0 : i32, i32
  }
  func.func @transform_4(%arg0: i32) -> (i32, i32) {
    %c0_i32 = arith.constant 0 : i32
    %c0_i32_0 = arith.constant 0 : i32
    %c0_i32_1 = arith.constant 0 : i32
    return %c0_i32, %c0_i32_0 : i32, i32
  }
  func.func @transform_5(%arg0: i32) -> (i32, i32) {
    %c0_i32 = arith.constant 0 : i32
    %c0_i32_0 = arith.constant 0 : i32
    %c0_i32_1 = arith.constant 0 : i32
    return %c0_i32, %c0_i32_0 : i32, i32
  }
  func.func @transform_6(%arg0: i32) -> (i32, i32) {
    %c0_i32 = arith.constant 0 : i32
    %c0_i32_0 = arith.constant 0 : i32
    %c0_i32_1 = arith.constant 0 : i32
    return %c0_i32, %c0_i32_0 : i32, i32
  }
  func.func @transform_7(%arg0: i32) -> (i32, i32) {
    %c0_i32 = arith.constant 0 : i32
    %c0_i32_0 = arith.constant 0 : i32
    %c0_i32_1 = arith.constant 0 : i32
    return %c0_i32, %c0_i32_0 : i32, i32
  }
}

</mosaic_0001>

<bundles_post_ra>
// kernel: tpu_custom_call.1
= control target key start
LH: loop header
LB: loop body
LE: loop exit
PB: predicated region body
PF: predicated region fallthrough
CT: control target
= control target key end

     0   :  { %13 = vsyncpa [#allocation3], 0  ;;  %s461_s0 = inlined_call_operand.hbm [shape: f32[16,32], index: 0, kind: input, shape index: {}]   ;;  %s462_s1 = inlined_call_operand.hbm [shape: f32[8,32], index: 1, kind: input, shape index: {}]   ;;  %s463_s2 = inlined_call_operand.hbm [shape: f32[32,32], index: 2, kind: input, shape index: {}]   ;;  %s464_s3 = inlined_call_operand.vmem [shape: f32[1,32], index: 3, kind: input, shape index: {}]   ;;  %s465_s4 = inlined_call_operand.hbm [shape: f32[32,32], index: 4, kind: input, shape index: {}]   ;;  %s466_s5 = inlined_call_operand.vmem [shape: f32[1,32], index: 5, kind: input, shape index: {}]   ;;  %s467_s6 = inlined_call_operand.hbm [shape: f32[16,32], index: 6, kind: output, shape index: {0}]   ;;  %s468_s7 = inlined_call_operand.hbm [shape: f32[8,32], index: 7, kind: output, shape index: {1}]  }
   0x1   :  { %14 = vsyncpa [#allocation6], 0 }
   0x2   :  { %15 = vsyncpa [#allocation9], 0 }
   0x3   :  { %16 = vsyncpa [#allocation4], 0  ;;  %s36_s26 = sshll.u32 %s462_s1, 4  ;;  %s37_s26 = int_to_ptr.hbm [resolvable:$true] %s36_s26 }
   0x4   :  { %17 = vsyncpa [#allocation12], 0  ;;  %s371_s27 = smov [#allocation5]   ;;  %s22_s8 = sshll.u32 %s461_s0, 4  ;;  %s23_s8 = int_to_ptr.hbm [resolvable:$true] %s22_s8 }
   0x5   :  { %s38_s28 = sshll.u32 %s371_s27, 4  ;;  %s372_s9 = smov [#allocation2]   ;;  %s39_s28 = int_to_ptr.vmem [resolvable:$true] %s38_s28 }
   0x6   :  { %41 = dma.hbm_to_vmem [thread:$0]  %s37_s26, 128, %s39_s28, [#allocation6]  }
   0x7   :  { %s24_s10 = sshll.u32 %s372_s9, 4  ;;  %s373_s11 = smov 128   ;;  %s25_s10 = int_to_ptr.vmem [resolvable:$true] %s24_s10 }
   0x8   :  { %s374_s12 = smov 8   ;;  %s46_s14 = sshll.u32 %s463_s2, 4  ;;  %s47_s14 = int_to_ptr.hbm [resolvable:$true] %s46_s14 }
   0x9   :  { %30 = dma.hbm_to_vmem [thread:$0]  %s23_s8, 256, %s25_s10, [#allocation3], %s373_s11, %s373_s11, %s374_s12  }
   0xa   :  { %s375_s15 = smov [#allocation7]   ;;  %s61_s18 = sshll.u32 %s465_s4, 4  ;;  %s62_s18 = int_to_ptr.hbm [resolvable:$true] %s61_s18 }
   0xb   :  { %s48_s16 = sshll.u32 %s375_s15, 4  ;;  %s376_s19 = smov [#allocation8]   ;;  %s49_s16 = int_to_ptr.vmem [resolvable:$true] %s48_s16 }
   0xc   :  { %54 = dma.hbm_to_vmem [thread:$0]  %s47_s14, 512, %s49_s16, [#allocation6], %s373_s11, %s373_s11, %s374_s12  }
   0xd   :  { %s63_s20 = sshll.u32 %s376_s19, 4  ;;  %s64_s20 = int_to_ptr.vmem [resolvable:$true] %s63_s20 }
   0xe   :  { %69 = dma.hbm_to_vmem [thread:$0]  %s62_s18, 512, %s64_s20, [#allocation9], %s373_s11, %s373_s11, %s374_s12  }
   0xf   :  { %361 = dma.done.wait [#allocation3], 256  }
  0x10   :  { %362 = vsyncadd [#allocation3], 4294967040 }
  0x11   :  { %363 = dma.done.wait [#allocation6], 640  }
  0x12   :  { %364 = vsyncadd [#allocation6], 4294966656 }
  0x13   :  { %365 = dma.done.wait [#allocation9], 512  }
  0x14   :  { %366 = vsyncadd [#allocation9], 4294966784  ;;  %v93_v0 = vld [vmem:[#allocation7 + $0x18] sm:$0xff]  ;;  %v92_v1 = vld [vmem:[#allocation7 + $0x10] sm:$0xff]  ;;  %vm103_vm0 = vcmask 261120   ;;  %s377_s23 = smov [#allocation11]  }
  0x15   :  { %203 = vmatpush.msra.mxu2 %v93_v0  ;;  %122 = vmatpush.msra.mxu0 %v93_v0  ;;  %v98_v2 = vld [vmem:[#allocation8 + $0x18] sm:$0xff]  ;;  %v91_v3 = vld [vmem:[#allocation7 + $0x8] sm:$0xff]  ;;  %v97_v4 = vld [vmem:[#allocation8 + $0x10] sm:$0xff]  ;;  %s181_s24 = sshll.u32 %s377_s23, 4  ;;  %s183_s27 = sshll.u32 %s468_s7, 4  ;;  %s182_s24 = int_to_ptr.vmem [resolvable:$true] %s181_s24  ;;  %s184_s27 = int_to_ptr.hbm [resolvable:$true] %s183_s27 }
  0x16   :  { %154 = vmatpush.msra.mxu1 %v98_v2  ;;  %v96_v5 = vld [vmem:[#allocation8 + $0x8] sm:$0xff]  ;;  %v90_v6 = vld [vmem:[#allocation7] sm:$0xff]  ;;  %v89_v7 = vld [vmem:[#allocation2 + $0x8] sm:$0xff]  ;;  %s378_s28 = smov [#allocation10]  }
  0x17   :  { %204 = vmatpush.msra.mxu2 %v92_v1  ;;  %123 = vmatpush.msra.mxu0 %v92_v1  ;;  %v95_v8 = vld [vmem:[#allocation8] sm:$0xff]  ;;  %v88_v9 = vld [vmem:[#allocation2] sm:$0xff]  ;;  %v94_v10 = vld [vmem:[#allocation5] sm:$0xff] }
  0x18   :  { %155 = vmatpush.msra.mxu1 %v97_v4  ;;  %v215_v11 = vld [vmem:[%s464_s3] ss:$0 sm:$0xff]  ;;  %s167_s3 = sshll.u32 %s378_s28, 4  ;;  %s168_s3 = int_to_ptr.vmem [resolvable:$true] %s167_s3 }
  0x19   :  { %205 = vmatpush.msra.mxu2 %v91_v3  ;;  %124 = vmatpush.msra.mxu0 %v91_v3  ;;  %v216_v12 = vld [vmem:[%s466_s5] ss:$0 sm:$0xff]  ;;  %s169_s5 = sshll.u32 %s467_s6, 4  ;;  %s170_s5 = int_to_ptr.hbm [resolvable:$true] %s169_s5 }
  0x1a   :  { %156 = vmatpush.msra.mxu1 %v96_v5 }
  0x1b   :  { %206 = vmatpush.msra.mxu2 %v90_v6  ;;  %125 = vmatpush.msra.mxu0 %v90_v6 }
  0x1c   :  { %201 = vmatmul.msk.f32.vlgmr.msra.gmra.mxu2 %vm103_vm0, %v89_v7  ;;  %157 = vmatpush.msra.mxu1 %v95_v8 }
  0x1d   :  { %200 = vmatmul.msk.f32.vlgmr.msra.gmra.mxu0 %vm103_vm0, %v88_v9  ;;  %202 = vmatmul.msk.f32.vlgmr.msra.gmra.mxu1 %vm103_vm0, %v94_v10 }
  0x9a   :  { %v127_v13 = vpop.f32.mrf.mxu0  ;;  %v159_v14 = vpop.f32.mrf.mxu1 }
  0x9b   :  { %v128_v15 = vadd.f32 %v215_v11, %v127_v13  ;;  %v160_v16 = vadd.f32 %v216_v12, %v159_v14 }
  0x9d   :  { %133 = vst.msk [vmem:[#allocation10] sm:$0xff] %vm103_vm0, %v128_v15 }
  0x9e   :  { %162 = vst.msk [vmem:[#allocation11] sm:$0xff] %vm103_vm0, %v160_v16 }
  0x9f   :  { %v130_v17 = vpop.f32.mrf.mxu2  ;;  %186 = dma.vmem_to_hbm [thread:$0]  %s182_s24, 128, %s184_s27, [#allocation12]  }
  0xa0   :  { %v131_v18 = vadd.f32 %v215_v11, %v130_v17 }
  0xa2   :  { %134 = vst.msk [vmem:[#allocation10 + $0x8] sm:$0xff] %vm103_vm0, %v131_v18 }
  0xa3   :  { %175 = dma.vmem_to_hbm [thread:$0]  %s168_s3, 256, %s170_s5, [#allocation4], %s373_s11, %s373_s11, %s374_s12  }
  0xa4   :  { %367 = dma.done.wait [#allocation4], 256  }
  0xa5   :  { %368 = vsyncadd [#allocation4], 4294967040 }
  0xa6   :  { %369 = dma.done.wait [#allocation12], 128  }
  0xa7   :  { %370 = vsyncadd [#allocation12], 4294967168 }
  0xa8   :  { %195 = vsyncpa [#allocation3], 1 }
  0xa9   :  { %196 = vsyncpa [#allocation6], 1 }
  0xaa   :  { %197 = vsyncpa [#allocation9], 1 }
  0xab   :  { %198 = vsyncpa [#allocation4], 1 }
  0xac   :  { %199 = vsyncpa [#allocation12], 1 }

</bundles_post_ra>
